<compile_context>
chip_gen: v7x
topology: tpu7x:2x2x1
jax: 0.10.0
libtpu: 0.0.40
codegen_flags: <defaults>
</compile_context>

<pallas_src>
import numpy as np
import jax
import jax.numpy as jnp
from jax import lax
from jax.experimental import pallas as pl
from jax.experimental.pallas import tpu as pltpu


# -----------------------------------------------------------------------------
# Host-side tap construction (exact scipy.ndimage.gaussian_filter semantics:
# truncate=4.0, mode='reflect', applied to a k x k delta).  That 2-D filter is
# two sequential 1-D passes, so the module's 2-D kernel is exactly outer(g, g);
# the separable rewrite below is exact, not approximate.
# -----------------------------------------------------------------------------
def gaussian_taps_1d(k: int, sigma: float, truncate: float = 4.0) -> np.ndarray:
    pad = (k - 1) // 2
    r = int(truncate * float(sigma) + 0.5)
    xs = np.arange(-r, r + 1, dtype=np.float64)
    w = np.exp(-0.5 * (xs / float(sigma)) ** 2)
    w /= w.sum()
    delta = np.zeros(k, dtype=np.float64)
    delta[pad] = 1.0
    dp = np.pad(delta, (r, r), mode="symmetric")  # scipy 'reflect' == numpy 'symmetric'
    return np.convolve(dp, w, mode="valid")       # shape (k,)


def _reflect_index(i: int, n: int) -> int:
    # torch.nn.ReflectionPad2d index mapping (valid while pad <= n - 1).
    if i < 0:
        return -i
    if i >= n:
        return 2 * n - 2 - i
    return i


def _pad_conv_matrix(n: int, g: np.ndarray) -> np.ndarray:
    """(n, n) matrix M with (M @ v)[i] = sum_t g[t] * v[reflect(i + t - pad)],
    i.e. reflection-pad by pad then VALID 1-D correlation with taps g."""
    k = len(g)
    pad = (k - 1) // 2
    M = np.zeros((n, n), dtype=np.float64)
    for i in range(n):
        for t in range(k):
            M[i, _reflect_index(i + t - pad, n)] += g[t]
    return M


# -----------------------------------------------------------------------------
# Pallas kernel: two MXU contractions per grid step, on G planes at a time.
# -----------------------------------------------------------------------------
def _gaussian_sep_kernel(av_ref, x_ref, bh_ref, o_ref):
    # av_ref: (TH, H)    reflect-pad + vertical 1-D Gaussian (row block)
    # x_ref : (G, H, W)  G planes taken straight from the NCHW layout
    # bh_ref: (W, W)     reflect-pad + horizontal 1-D Gaussian (right-multiply)
    # o_ref : (G, TH, W)
    mdt = av_ref.dtype
    G, H, W = x_ref.shape
    TH = av_ref.shape[0]

    xv = x_ref[...].astype(mdt)
    # Broadcast Av across the G-plane batch so the batched dot_general already
    # produces (g, h, w) ordering -> no in-kernel relayout/transpose.
    avb = jnp.broadcast_to(av_ref[...], (G, TH, H))

    # Vertical pass (contraction over H), f32 accumulation on the MXU.
    t = jnp.einsum("ghk,gkw->ghw", avb, xv, preferred_element_type=jnp.float32)

    # Horizontal pass (contraction over W).  Casting t back to the MXU operand
    # dtype deliberately trades the vertical pass' f32 accumulation for
    # full-rate bf16 MXU inputs on the second pass (fine for a blur).
    o = jnp.einsum("ghw,wv->ghv", t.astype(mdt), bh_ref[...],
                   preferred_element_type=jnp.float32)
    o_ref[...] = o.astype(o_ref.dtype)


def gaussian_layer_forward(x: jax.Array, k: int = 21, sigma: float = 9.0,
                           mxu_dtype=jnp.bfloat16) -> jax.Array:
    """x: (N, C, H, W).  Equivalent to ReflectionPad2d((k-1)//2) followed by a
    depthwise k x k Gaussian Conv2d (stride 1, no bias, same taps per channel).

    `sigma` may be changed per call (mirrors the module's runtime re-init).
    `mxu_dtype=jnp.bfloat16` (default) is the full-rate MXU path on all
    generations; pass jnp.float32 for bit-tight numerics."""
    N, C, H, W = x.shape
    pad = (k - 1) // 2
    if pad >= H or pad >= W:
        raise ValueError(
            f"ReflectionPad2d requires pad < spatial dims: pad={pad}, H={H}, W={W}")

    g = gaussian_taps_1d(k, sigma)
    av = jnp.asarray(_pad_conv_matrix(H, g), dtype=mxu_dtype)       # (H,H) left-mult
    bh = jnp.asarray(_pad_conv_matrix(W, g).T, dtype=mxu_dtype)     # (W,W) right-mult

    NC = N * C
    x3 = x.reshape(NC, H, W)        # free: leading-dim merge, no data movement

    xb = x.dtype.itemsize
    ob = x.dtype.itemsize
    mb = np.dtype(mxu_dtype).itemsize

    # ---- Plane-group size G: aim for ~128 lanes worth of output work per grid
    # step (few steps, better-fed MXU) while dividing N*C and staying inside a
    # conservative per-step VMEM budget that is valid on every generation.
    target = max(1, 128 // W) if W < 128 else 1
    budget = 24 << 20
    G = 1
    for d in range(1, min(target, NC) + 1):
        if NC % d != 0:
            continue
        step_bytes = 2 * d * H * W * (xb + ob) + d * H * W * (mb + 8) + d * H * H * mb
        if step_bytes <= budget:
            G = d
    n_groups = NC // G

    # ---- Optional H split: only when each half is still MXU-sized (>=256 rows)
    # so we never emit starved 8-row tiles.  For small H (the demo) this stays 1.
    # TODO(synk): gate the split on pltpu.get_tpu_info() so single-TC v5e/v6e
    # never pay the extra serial grid step while dual-TC v7x shards it.
    n_h = 2 if (H >= 512 and H % 16 == 0) else 1
    TH = H // n_h

    # Explicit VMEM budget (v5e scoped default is only 16 MiB; v7x physical is
    # 64 MiB).  Double-buffered blocks + resident tap matrices + intermediates.
    est = (2 * G * H * W * xb + 2 * G * TH * W * ob
           + 2 * TH * H * mb + 2 * W * W * mb
           + G * H * W * (mb + 4) + G * TH * H * mb + 2 * G * TH * W * 4)
    vmem_limit = int(min(48 << 20, max(32 << 20, 4 * est)))

    flops = 2 * NC * H * H * W + 2 * NC * H * W * W
    bytes_accessed = (x.size * xb + x.size * ob
                      + n_groups * n_h * (TH * H + W * W) * mb)

    out3 = pl.pallas_call(
        _gaussian_sep_kernel,
        out_shape=jax.ShapeDtypeStruct((NC, H, W), x.dtype),
        grid=(n_groups, n_h),
        in_specs=[
            pl.BlockSpec((TH, H), lambda gi, hi: (hi, 0)),        # Av row block
            pl.BlockSpec((G, H, W), lambda gi, hi: (gi, 0, 0)),   # G NCHW planes
            pl.BlockSpec((W, W), lambda gi, hi: (0, 0)),          # shared Bh taps
        ],
        out_specs=pl.BlockSpec((G, TH, W), lambda gi, hi: (gi, hi, 0)),
        compiler_params=pltpu.CompilerParams(
            dimension_semantics=("parallel", "parallel"),
            vmem_limit_bytes=vmem_limit),
        cost_estimate=pl.CostEstimate(
            flops=flops, transcendentals=0, bytes_accessed=bytes_accessed),
    )(av, x3, bh)

    return out3.reshape(N, C, H, W)   # free: leading-dim split


if __name__ == "__main__":
    # Module defaults: k=21, sigma=9 -> pad=10.  Spatial dims must exceed pad.
    LAYERS, K, SIGMA = 4, 21, 9.0
    N, H, W = 2, 16, 16

    key = jax.random.PRNGKey(0)
    x = jax.random.normal(key, (N, LAYERS, H, W), dtype=jnp.float32)

    # Reference: PyTorch-equivalent reflection pad + depthwise conv via XLA.
    g = gaussian_taps_1d(K, SIGMA)
    w2d = np.outer(g, g).astype(np.float32)            # the module's 2-D kernel
    pad = (K - 1) // 2
    xp = jnp.pad(x, ((0, 0), (0, 0), (pad, pad), (pad, pad)), mode="reflect")
    w4 = jnp.asarray(np.broadcast_to(w2d, (LAYERS, 1, K, K)).copy())
    ref = lax.conv_general_dilated(
        xp, w4, window_strides=(1, 1), padding="VALID",
        dimension_numbers=("NCHW", "OIHW", "NCHW"),
        feature_group_count=LAYERS)
    ref = np.asarray(ref)

    # Exactness check on the f32 MXU path.
    out_f32 = jax.block_until_ready(
        gaussian_layer_forward(x, k=K, sigma=SIGMA, mxu_dtype=jnp.float32))
    np.testing.assert_allclose(np.asarray(out_f32), ref, rtol=1e-3, atol=1e-4)

    # Production-default bf16 MXU operands (f32 accumulation): loose check.
    out_bf16 = jax.block_until_ready(
        gaussian_layer_forward(x, k=K, sigma=SIGMA, mxu_dtype=jnp.bfloat16))
    np.testing.assert_allclose(np.asarray(out_bf16), ref, rtol=1e-1, atol=1e-2)

    print("KERNEL_OK")
</pallas_src>

<mosaic_0001>
module attributes {stable_mosaic.version = 11 : i64} {
  func.func @_gaussian_sep_kernel(%arg0: i32, %arg1: i32, %arg2: memref<16x16xf32, #tpu.memory_space<vmem>>, %arg3: memref<8x16x16xf32, #tpu.memory_space<vmem>>, %arg4: memref<16x16xf32, #tpu.memory_space<vmem>>, %arg5: memref<8x16x16xf32, #tpu.memory_space<vmem>>) attributes {dimension_semantics = [#tpu.dimension_semantics<parallel>, #tpu.dimension_semantics<parallel>], iteration_bounds = array<i64: 1, 1>, scalar_prefetch = 0 : i64, scratch_operands = 0 : i64, tpu.core_type = #tpu.core_type<tc>, window_params = [{transform_indices = @transform_0, window_bounds = array<i64: 16, 16>}, {transform_indices = @transform_1, window_bounds = array<i64: 8, 16, 16>}, {pipeline_mode = #tpu.pipeline_mode<synchronous>, transform_indices = @transform_2, window_bounds = array<i64: 16, 16>}, {transform_indices = @transform_3, window_bounds = array<i64: 8, 16, 16>}]} {
    %c0 = arith.constant 0 : index
    %c0_0 = arith.constant 0 : index
    %c0_1 = arith.constant 0 : index
    %0 = vector.load %arg3[%c0, %c0_0, %c0_1] : memref<8x16x16xf32, #tpu.memory_space<vmem>>, vector<8x16x16xf32>
    %c0_2 = arith.constant 0 : index
    %c0_3 = arith.constant 0 : index
    %1 = vector.load %arg2[%c0_2, %c0_3] : memref<16x16xf32, #tpu.memory_space<vmem>>, vector<16x16xf32>
    %2 = vector.shape_cast %1 : vector<16x16xf32> to vector<1x16x16xf32>
    %3 = vector.broadcast %2 : vector<1x16x16xf32> to vector<8x16x16xf32>
    "tpu.trace_start"() <{level = 10 : i32, message = "ghk,gkw->ghw"}> : () -> ()
    %cst = arith.constant dense<0.000000e+00> : vector<8x16x16xf32>
    %4 = tpu.matmul %3, %0, %cst {dimension_numbers = #tpu.dot_dimension_numbers<[2], [1], [1], [2], [0, 0, 0, 1, 1, 2], [0], [0]>} : vector<8x16x16xf32>, vector<8x16x16xf32>, vector<8x16x16xf32> -> vector<8x16x16xf32>
    "tpu.trace_stop"() : () -> ()
    %c0_4 = arith.constant 0 : index
    %c0_5 = arith.constant 0 : index
    %5 = vector.load %arg4[%c0_4, %c0_5] : memref<16x16xf32, #tpu.memory_space<vmem>>, vector<16x16xf32>
    "tpu.trace_start"() <{level = 10 : i32, message = "ghw,wv->ghv"}> : () -> ()
    %cst_6 = arith.constant dense<0.000000e+00> : vector<8x16x16xf32>
    %6 = tpu.matmul %4, %5, %cst_6 {dimension_numbers = #tpu.dot_dimension_numbers<[2], [0], [0, 1], [1], [0, 0, 0, 1, 1, 1], [], []>} : vector<8x16x16xf32>, vector<16x16xf32>, vector<8x16x16xf32> -> vector<8x16x16xf32>
    "tpu.trace_stop"() : () -> ()
    %c0_7 = arith.constant 0 : index
    %c0_8 = arith.constant 0 : index
    %c0_9 = arith.constant 0 : index
    %7 = vector.load %arg5[%c0_7, %c0_8, %c0_9] : memref<8x16x16xf32, #tpu.memory_space<vmem>>, vector<8x16x16xf32>
    tpu.vector_store %arg5[%c0_7, %c0_8, %c0_9], %6 {strides = array<i32>} : memref<8x16x16xf32, #tpu.memory_space<vmem>>, vector<8x16x16xf32>,
    return
  }
  func.func @transform_0(%arg0: i32, %arg1: i32) -> (i32, i32) {
    %c0_i32 = arith.constant 0 : i32
    %c0_i32_0 = arith.constant 0 : i32
    return %arg1, %c0_i32 : i32, i32
  }
  func.func @transform_1(%arg0: i32, %arg1: i32) -> (i32, i32, i32) {
    %c0_i32 = arith.constant 0 : i32
    %c0_i32_0 = arith.constant 0 : i32
    %c0_i32_1 = arith.constant 0 : i32
    return %arg0, %c0_i32, %c0_i32_0 : i32, i32, i32
  }
  func.func @transform_2(%arg0: i32, %arg1: i32) -> (i32, i32) {
    %c0_i32 = arith.constant 0 : i32
    %c0_i32_0 = arith.constant 0 : i32
    %c0_i32_1 = arith.constant 0 : i32
    return %c0_i32, %c0_i32_0 : i32, i32
  }
  func.func @transform_3(%arg0: i32, %arg1: i32) -> (i32, i32, i32) {
    %c0_i32 = arith.constant 0 : i32
    %c0_i32_0 = arith.constant 0 : i32
    return %arg0, %arg1, %c0_i32 : i32, i32, i32
  }
}

</mosaic_0001>

<bundles_post_ra>
// kernel: tpu_custom_call.1
= control target key start
LH: loop header
LB: loop body
LE: loop exit
PB: predicated region body
PF: predicated region fallthrough
CT: control target
= control target key end

     0   :  { %8 = vsyncpa [#allocation3], 0  ;;  %s1355_s0 = inlined_call_operand.hbm [shape: f32[16,16], index: 0, kind: input, shape index: {}]   ;;  %s1356_s1 = inlined_call_operand.hbm [shape: f32[8,16,16], index: 1, kind: input, shape index: {}]   ;;  %s1357_s2 = inlined_call_operand.hbm [shape: f32[16,16], index: 2, kind: input, shape index: {}]   ;;  %s1358_s3 = inlined_call_operand.hbm [shape: f32[8,16,16], index: 3, kind: output, shape index: {}]  }
   0x1   :  { %9 = vsyncpa [#allocation6], 0 }
   0x2   :  { %10 = vsyncpa [#allocation4], 0  ;;  %s1214_s12 = smov [#allocation5]   ;;  %s1215_s14 = smov [#allocation2]  }
   0x3   :  { %s28_s13 = sshll.u32 %s1214_s12, 4  ;;  %s16_s15 = sshll.u32 %s1215_s14, 4  ;;  %s29_s13 = int_to_ptr.vmem [resolvable:$true] %s28_s13  ;;  %s1240_s15 = int_to_ptr.vmem [resolvable:$true] %s16_s15 }
   0x4   :  { %s1120_s18 = scalar_lea.hbm %s1356_s1, 2048 }
   0x5   :  { %p1121_p0 = scmp.ne.s32.totalorder %s1356_s1, %s1120_s18  ;;  %p1124_p1 = scmp.lt.u32.totalorder %s1120_s18, %s1356_s1 }
   0x7   :  { %p1126_p2 = pnand %p1124_p1, %p1121_p0 }
   0x9   :  { %1129 = shalt.err (!%p1126_p2)
}
   0xa   :  { %s1130_s23 = scalar_lea.vmem %s29_s13, 2048  ;;  %p1135_p4 = scmp.lt.s32.totalorder %s29_s13, %s29_s13 }
   0xb   :  { %p1131_p3 = scmp.ne.s32.totalorder %s29_s13, %s1130_s23  ;;  %p1136_p5 = scmp.lt.s32.totalorder %s1130_s23, %s1130_s23 }
   0xd   :  { %p1137_p6 = por %p1136_p5, %p1135_p4 }
   0xf   :  { %p1138_p7 = pnand %p1137_p6, %p1131_p3 }
  0x11   :  { %1141 = shalt.err (!%p1138_p7)
}
  0x12   :  { %s1216_s24 = smov 128   ;;  %s1217_s25 = smov 8  }
  0x13   :  { %34 = dma.hbm_to_vmem [thread:$0]  %s1356_s1, 2048, %s29_s13, [#allocation6], %s1216_s24, %s1216_s24, %s1217_s25  }
  0x14   :  { %s1142_s30 = scalar_lea.hbm %s1355_s0, 256 }
  0x15   :  { %p1143_p8 = scmp.ne.s32.totalorder %s1355_s0, %s1142_s30  ;;  %p1146_p9 = scmp.lt.u32.totalorder %s1142_s30, %s1355_s0 }
  0x17   :  { %p1148_p10 = pnand %p1146_p9, %p1143_p8 }
  0x19   :  { %1151 = shalt.err (!%p1148_p10)
}
  0x1a   :  { %s1152_s8 = scalar_lea.vmem %s1240_s15, 256  ;;  %p1157_p12 = scmp.lt.s32.totalorder %s1240_s15, %s1240_s15 }
  0x1b   :  { %p1153_p11 = scmp.ne.s32.totalorder %s1240_s15, %s1152_s8  ;;  %p1158_p13 = scmp.lt.s32.totalorder %s1152_s8, %s1152_s8 }
  0x1d   :  { %p1159_p0 = por %p1158_p13, %p1157_p12 }
  0x1f   :  { %p1160_p1 = pnand %p1159_p0, %p1153_p11 }
  0x21   :  { %1163 = shalt.err (!%p1160_p1)
}
  0x22   :  { %22 = dma.hbm_to_vmem [thread:$0]  %s1355_s0, 256, %s1240_s15, [#allocation3], %s1216_s24, %s1216_s24, %s1217_s25  }
  0x23   :  { %s1218_s10 = smov [#allocation7]   ;;  %s1164_s14 = scalar_lea.hbm %s1357_s2, 256 }
  0x24   :  { %s40_s11 = sshll.u32 %s1218_s10, 4  ;;  %p1165_p2 = scmp.ne.s32.totalorder %s1357_s2, %s1164_s14  ;;  %s41_s11 = int_to_ptr.vmem [resolvable:$true] %s40_s11 }
  0x25   :  { %p1168_p3 = scmp.lt.u32.totalorder %s1164_s14, %s1357_s2 }
  0x27   :  { %p1170_p4 = pnand %p1168_p3, %p1165_p2 }
  0x29   :  { %1173 = shalt.err (!%p1170_p4)
}
  0x2a   :  { %s1174_s20 = scalar_lea.vmem %s41_s11, 256  ;;  %p1179_p6 = scmp.lt.s32.totalorder %s41_s11, %s41_s11 }
  0x2b   :  { %p1175_p5 = scmp.ne.s32.totalorder %s41_s11, %s1174_s20  ;;  %p1180_p7 = scmp.lt.s32.totalorder %s1174_s20, %s1174_s20 }
  0x2d   :  { %p1181_p8 = por %p1180_p7, %p1179_p6 }
  0x2f   :  { %p1182_p9 = pnand %p1181_p8, %p1175_p5 }
  0x31   :  { %1185 = shalt.err (!%p1182_p9)
}
  0x32   :  { %46 = dma.hbm_to_vmem [thread:$0]  %s1357_s2, 256, %s41_s11, [#allocation6], %s1216_s24, %s1216_s24, %s1217_s25  }
  0x33   :  { %1208 = dma.done.wait [#allocation3], 256  }
  0x34   :  { %1209 = vsyncadd [#allocation3], 4294967040 }
  0x35   :  { %1210 = dma.done.wait [#allocation6], 2304  }
  0x36   :  { %1211 = vsyncadd [#allocation6], 4294964992  ;;  %vm74_vm0 = vcmask 130048   ;;  %v56_v0 = vld [vmem:[#allocation5] sm:$0xff]  ;;  %v57_v1 = vld [vmem:[#allocation5 + $0x8] sm:$0xff]  ;;  %s1219_s2 = smov [#allocation8]  }
  0x37   :  { %v72_v2 = vld [vmem:[#allocation2] sm:$0xff]  ;;  %v1076_v3 = vpack.c.bf16 %v57_v1, %v56_v0  ;;  %v59_v5 = vld [vmem:[#allocation5 + $0x18] sm:$0xff]  ;;  %v60_v7 = vld [vmem:[#allocation5 + $0x20] sm:$0xff]  ;;  %s897_s21 = sshll.u32 %s1219_s2, 4  ;;  %s898_s21 = int_to_ptr.vmem [resolvable:$true] %s897_s21 }
  0x38   :  { %996 = vmatprep.mubr.msk.f32.mxu0 %vm74_vm0, %v72_v2  ;;  %v58_v4 = vld [vmem:[#allocation5 + $0x10] sm:$0xff]  ;;  %1003 = vmatprep.mubr.msk.f32.mxu1 %vm74_vm0, %v72_v2  ;;  %v61_v8 = vld [vmem:[#allocation5 + $0x28] sm:$0xff]  ;;  %v63_v11 = vld [vmem:[#allocation5 + $0x38] sm:$0xff]  ;;  %s1186_s22 = scalar_lea.vmem %s898_s21, 2048  ;;  %p1191_p11 = scmp.lt.s32.totalorder %s898_s21, %s898_s21 }
  0x39   :  { %v1080_v6 = vpack.c.bf16 %v59_v5, %v58_v4  ;;  %v62_v9 = vld [vmem:[#allocation5 + $0x30] sm:$0xff]  ;;  %1077 = vmatprep.subr.bf16.mxu0 %v1076_v3  ;;  %v1084_v10 = vpack.c.bf16 %v61_v8, %v60_v7  ;;  %v64_v12 = vld [vmem:[#allocation5 + $0x40] sm:$0xff]  ;;  %v65_v13 = vld [vmem:[#allocation5 + $0x48] sm:$0xff]  ;;  %p1187_p10 = scmp.ne.s32.totalorder %s898_s21, %s1186_s22  ;;  %p1192_p12 = scmp.lt.s32.totalorder %s1186_s22, %s1186_s22 }
  0x3a   :  { %1079 = vmatpush3.bf16.msra.mxu0 %v1076_v3  ;;  %v73_v14 = vld [vmem:[#allocation2 + $0x8] sm:$0xff]  ;;  %v1088_v15 = vpack.c.bf16 %v63_v11, %v62_v9  ;;  %v66_v16 = vld [vmem:[#allocation5 + $0x50] sm:$0xff]  ;;  %v1092_v18 = vpack.c.bf16 %v65_v13, %v64_v12  ;;  %v68_v19 = vld [vmem:[#allocation5 + $0x60] sm:$0xff] }
  0x3b   :  { %1081 = vmatprep.subr.bf16.mxu1 %v1080_v6  ;;  %v67_v17 = vld [vmem:[#allocation5 + $0x58] sm:$0xff]  ;;  %1085 = vmatprep.subr.bf16.mxu0 %v1084_v10  ;;  %v69_v20 = vld [vmem:[#allocation5 + $0x68] sm:$0xff]  ;;  %v70_v22 = vld [vmem:[#allocation5 + $0x70] sm:$0xff]  ;;  %p1193_p13 = por %p1192_p12, %p1191_p11 }
  0x3c   :  { %1083 = vmatpush3.bf16.msra.mxu1 %v1080_v6  ;;  %v1096_v21 = vpack.c.bf16 %v67_v17, %v66_v16  ;;  %v71_v23 = vld [vmem:[#allocation5 + $0x78] sm:$0xff]  ;;  %v1100_v24 = vpack.c.bf16 %v69_v20, %v68_v19  ;;  %v681_v25 = vld [vmem:[#allocation7] sm:$0xff]  ;;  %v682_v26 = vld [vmem:[#allocation7 + $0x8] sm:$0xff] }
  0x3d   :  { %1089 = vmatprep.subr.bf16.mxu1 %v1088_v15  ;;  %997 = vmatmul.mubr.msk.f32.vlgmr.msra.gmra.mrb[0].mxu0 %vm74_vm0, %v73_v14  ;;  %v1104_v27 = vpack.c.bf16 %v71_v23, %v70_v22  ;;  %v1108_v28 = vpack.c.bf16 %v682_v26, %v681_v25  ;;  %p1194_p0 = pnand %p1193_p13, %p1187_p10 }
  0x3e   :  { %1087 = vmatpush3.bf16.msra.mxu0 %v1084_v10  ;;  %1010 = vmatprep.mubr.msk.f32.mxu0 %vm74_vm0, %v72_v2 }
  0x3f   :  { %1004 = vmatmul.mubr.msk.f32.vlgmr.msra.gmra.mrb[0].mxu1 %vm74_vm0, %v73_v14  ;;  %1093 = vmatprep.subr.bf16.mxu0 %v1092_v18 }
  0x40   :  { %1091 = vmatpush3.bf16.msra.mxu1 %v1088_v15  ;;  %1017 = vmatprep.mubr.msk.f32.mxu1 %vm74_vm0, %v72_v2 }
  0x41   :  { %1011 = vmatmul.mubr.msk.f32.vlgmr.msra.gmra.mrb[2].mxu0 %vm74_vm0, %v73_v14  ;;  %1097 = vmatprep.subr.bf16.mxu1 %v1096_v21 }
  0x42   :  { %1095 = vmatpush3.bf16.msra.mxu0 %v1092_v18  ;;  %1024 = vmatprep.mubr.msk.f32.mxu0 %vm74_vm0, %v72_v2 }
  0x43   :  { %1018 = vmatmul.mubr.msk.f32.vlgmr.msra.gmra.mrb[2].mxu1 %vm74_vm0, %v73_v14  ;;  %1101 = vmatprep.subr.bf16.mxu0 %v1100_v24 }
  0x44   :  { %1099 = vmatpush3.bf16.msra.mxu1 %v1096_v21  ;;  %1031 = vmatprep.mubr.msk.f32.mxu1 %vm74_vm0, %v72_v2 }
  0x45   :  { %1025 = vmatmul.mubr.msk.f32.vlgmr.msra.gmra.mrb[4].mxu0 %vm74_vm0, %v73_v14  ;;  %1105 = vmatprep.subr.bf16.mxu1 %v1104_v27 }
  0x46   :  { %1103 = vmatpush3.bf16.msra.mxu0 %v1100_v24  ;;  %1038 = vmatprep.mubr.msk.f32.mxu0 %vm74_vm0, %v72_v2 }
  0x47   :  { %1032 = vmatmul.mubr.msk.f32.vlgmr.msra.gmra.mrb[4].mxu1 %vm74_vm0, %v73_v14  ;;  %1109 = vmatprep.subr.bf16.mxu0 %v1108_v28 }
  0x48   :  { %1107 = vmatpush3.bf16.msra.mxu1 %v1104_v27  ;;  %1045 = vmatprep.mubr.msk.f32.mxu1 %vm74_vm0, %v72_v2 }
  0x49   :  { %1039 = vmatmul.mubr.msk.f32.vlgmr.msra.gmra.mrb[6].mxu0 %vm74_vm0, %v73_v14  ;;  %1112 = vmatprep.subr.bf16.mxu1 %v1108_v28 }
  0x4a   :  { %1111 = vmatpush3.bf16.msra.mxu0 %v1108_v28 }
  0x4b   :  { %1046 = vmatmul.mubr.msk.f32.vlgmr.msra.gmra.mrb[6].mxu1 %vm74_vm0, %v73_v14 }
  0x4c   :  { %1113 = vmatpush3.bf16.msra.mxu1 %v1108_v28 }
 0x110   :  { %v998_v29 = vpop.f32.mrb[0].mxu0 }
 0x111   :  { %v147_v30 = vpop.f32.mrb[1].mxu0 }
 0x112   :  { %1052 = vmatprep.mubr.msk.f32.mxu0 %vm74_vm0, %v147_v30  ;;  %v1005_v31 = vpop.f32.mrb[0].mxu1 }
 0x113   :  { %1053 = vmatmul.mubr.msk.f32.vlgmr.msra.gmra.mrb[8].mxu0 %vm74_vm0, %v998_v29  ;;  %v222_v32 = vpop.f32.mrb[1].mxu1 }
 0x114   :  { %v1012_v33 = vpop.f32.mrb[2].mxu0  ;;  %1055 = vmatprep.mubr.msk.f32.mxu0 %vm74_vm0, %v222_v32 }
 0x115   :  { %v297_v34 = vpop.f32.mrb[3].mxu0 }
 0x116   :  { %v1019_v35 = vpop.f32.mrb[2].mxu1 }
 0x117   :  { %1056 = vmatmul.mubr.msk.f32.gmra.mrb[10].mxu0 %vm74_vm0, %v1005_v31  ;;  %v372_v36 = vpop.f32.mrb[3].mxu1 }
 0x118   :  { %v1026_v37 = vpop.f32.mrb[4].mxu0  ;;  %1058 = vmatprep.mubr.msk.f32.mxu0 %vm74_vm0, %v297_v34 }
 0x119   :  { %v447_v38 = vpop.f32.mrb[5].mxu0 }
 0x11a   :  { %1064 = vmatprep.mubr.msk.f32.mxu1 %vm74_vm0, %v447_v38  ;;  %v1033_v39 = vpop.f32.mrb[4].mxu1 }
 0x11b   :  { %1059 = vmatmul.mubr.msk.f32.gmra.mrb[12].mxu0 %vm74_vm0, %v1012_v33  ;;  %1065 = vmatmul.mubr.msk.f32.vlgmr.msra.gmra.mrb[8].mxu1 %vm74_vm0, %v1026_v37  ;;  %v522_v40 = vpop.f32.mrb[5].mxu1 }
 0x11c   :  { %1061 = vmatprep.mubr.msk.f32.mxu0 %vm74_vm0, %v372_v36  ;;  %1067 = vmatprep.mubr.msk.f32.mxu1 %vm74_vm0, %v522_v40  ;;  %v1040_v41 = vpop.f32.mrb[6].mxu0 }
 0x11d   :  { %v597_v42 = vpop.f32.mrb[7].mxu0 }
 0x11e   :  { %v1047_v43 = vpop.f32.mrb[6].mxu1 }
 0x11f   :  { %1062 = vmatmul.mubr.msk.f32.gmra.mrb[14].mxu0 %vm74_vm0, %v1019_v35  ;;  %1068 = vmatmul.mubr.msk.f32.gmra.mrb[10].mxu1 %vm74_vm0, %v1033_v39  ;;  %v672_v44 = vpop.f32.mrb[7].mxu1 }
 0x120   :  { %1070 = vmatprep.mubr.msk.f32.mxu1 %vm74_vm0, %v597_v42 }
 0x123   :  { %1071 = vmatmul.mubr.msk.f32.gmra.mrb[12].mxu1 %vm74_vm0, %v1040_v41 }
 0x124   :  { %1073 = vmatprep.mubr.msk.f32.mxu1 %vm74_vm0, %v672_v44 }
 0x127   :  { %1074 = vmatmul.mubr.msk.f32.gmra.mrb[14].mxu1 %vm74_vm0, %v1047_v43 }
 0x1e6   :  { %v1054_v45 = vpop.f32.mrb[8].mxu0 }
 0x1e7   :  { %877 = vst.msk [vmem:[#allocation8 + $0x8] sm:$0xff] %vm74_vm0, %v1054_v45  ;;  %v797_v46 = vpop.f32.mrb[9].mxu0 }
 0x1e8   :  { %876 = vst.msk [vmem:[#allocation8] sm:$0xff] %vm74_vm0, %v797_v46 }
 0x1ea   :  { %v1057_v47 = vpop.f32.mrb[10].mxu0 }
 0x1eb   :  { %879 = vst.msk [vmem:[#allocation8 + $0x18] sm:$0xff] %vm74_vm0, %v1057_v47  ;;  %v807_v48 = vpop.f32.mrb[11].mxu0 }
 0x1ec   :  { %878 = vst.msk [vmem:[#allocation8 + $0x10] sm:$0xff] %vm74_vm0, %v807_v48 }
 0x1ee   :  { %v1060_v49 = vpop.f32.mrb[12].mxu0  ;;  %v1066_v50 = vpop.f32.mrb[8].mxu1 }
 0x1ef   :  { %881 = vst.msk [vmem:[#allocation8 + $0x28] sm:$0xff] %vm74_vm0, %v1060_v49  ;;  %885 = vst.msk [vmem:[#allocation8 + $0x48] sm:$0xff] %vm74_vm0, %v1066_v50  ;;  %v817_v51 = vpop.f32.mrb[13].mxu0  ;;  %v837_v52 = vpop.f32.mrb[9].mxu1 }
 0x1f0   :  { %880 = vst.msk [vmem:[#allocation8 + $0x20] sm:$0xff] %vm74_vm0, %v817_v51  ;;  %884 = vst.msk [vmem:[#allocation8 + $0x40] sm:$0xff] %vm74_vm0, %v837_v52 }
 0x1f2   :  { %v1063_v53 = vpop.f32.mrb[14].mxu0  ;;  %v1069_v54 = vpop.f32.mrb[10].mxu1 }
 0x1f3   :  { %883 = vst.msk [vmem:[#allocation8 + $0x38] sm:$0xff] %vm74_vm0, %v1063_v53  ;;  %887 = vst.msk [vmem:[#allocation8 + $0x58] sm:$0xff] %vm74_vm0, %v1069_v54  ;;  %v827_v55 = vpop.f32.mrb[15].mxu0  ;;  %v847_v56 = vpop.f32.mrb[11].mxu1 }
 0x1f4   :  { %882 = vst.msk [vmem:[#allocation8 + $0x30] sm:$0xff] %vm74_vm0, %v827_v55  ;;  %886 = vst.msk [vmem:[#allocation8 + $0x50] sm:$0xff] %vm74_vm0, %v847_v56 }
 0x1f6   :  { %v1072_v57 = vpop.f32.mrb[12].mxu1 }
 0x1f7   :  { %889 = vst.msk [vmem:[#allocation8 + $0x68] sm:$0xff] %vm74_vm0, %v1072_v57  ;;  %v857_v58 = vpop.f32.mrb[13].mxu1 }
 0x1f8   :  { %888 = vst.msk [vmem:[#allocation8 + $0x60] sm:$0xff] %vm74_vm0, %v857_v58 }
 0x1fa   :  { %v1075_v59 = vpop.f32.mrb[14].mxu1 }
 0x1fb   :  { %891 = vst.msk [vmem:[#allocation8 + $0x78] sm:$0xff] %vm74_vm0, %v1075_v59  ;;  %v867_v60 = vpop.f32.mrb[15].mxu1 }
 0x1fc   :  { %890 = vst.msk [vmem:[#allocation8 + $0x70] sm:$0xff] %vm74_vm0, %v867_v60 }
 0x1fd   :  { %1197 = shalt.err (!%p1194_p0)
}
 0x1fe   :  { %s1198_s27 = scalar_lea.hbm %s1358_s3, 2048 }
 0x1ff   :  { %p1199_p1 = scmp.ne.s32.totalorder %s1358_s3, %s1198_s27  ;;  %p1202_p2 = scmp.lt.u32.totalorder %s1198_s27, %s1358_s3 }
 0x201   :  { %p1204_p3 = pnand %p1202_p2, %p1199_p1 }
 0x203   :  { %1207 = shalt.err (!%p1204_p3)
}
 0x204   :  { %903 = dma.vmem_to_hbm [thread:$0]  %s898_s21, 2048, %s1358_s3, [#allocation4], %s1216_s24, %s1216_s24, %s1217_s25  }
 0x205   :  { %1212 = dma.done.wait [#allocation4], 2048  }
 0x206   :  { %1213 = vsyncadd [#allocation4], 4294965248 }
 0x207   :  { %907 = vsyncpa [#allocation3], 1 }
 0x208   :  { %908 = vsyncpa [#allocation6], 1 }
 0x209   :  { %909 = vsyncpa [#allocation4], 1 }

</bundles_post_ra>
